<compile_context>
chip_gen: v6e
topology: v6e:2x2x1
jax: 0.10.0
libtpu: 0.0.40
codegen_flags: <defaults>
</compile_context>

<pallas_src>
import functools

import jax
import jax.numpy as jnp
from jax import lax
from jax.experimental import pallas as pl
from jax.experimental.pallas import tpu as pltpu

HIDDEN = 64        # logical hidden width of the PyTorch module
HIDDEN_PAD = 128   # hidden padded to one full lane width (exact zero padding)


def _round_up(x, m):
    return (x + m - 1) // m * m


def _choose_tile_b(B):
    """Batch tile: multiple of 8, never larger than B (so only the trailing
    grid block can be ragged), capped at 1024 rows, and >= 2 grid steps when
    the batch is large enough (v7x has 2 TensorCores)."""
    if B < 8:
        return B                       # single block == full (tiny) batch
    t = min(1024, (B // 8) * 8)
    if B >= 16 and pl.cdiv(B, t) < 2:
        t = max(8, ((B // 2) // 8) * 8)
    return t


def _agent_kernel(x_ref, w1_ref, b1_ref, w2_ref, b2_ref,
                  wq_ref, bq_ref, we_ref, be_ref,
                  q_ref, e_ref, *, matmul_dtype):
    """One batch tile: fc1 -> relu -> fc2 -> relu -> q_head / embed_head.

    Matmul operands in matmul_dtype (bf16 fast path), accumulation and the
    bias/ReLU/normalize epilogue in f32.
    """
    x = x_ref[...].astype(matmul_dtype)

    # fc1 + relu
    h = jnp.dot(x, w1_ref[...], preferred_element_type=jnp.float32) + b1_ref[...]
    h = jnp.maximum(h, 0.0)

    # fc2 + relu
    h = jnp.dot(h.astype(matmul_dtype), w2_ref[...],
                preferred_element_type=jnp.float32) + b2_ref[...]
    h = jnp.maximum(h, 0.0)
    hm = h.astype(matmul_dtype)

    # Heads (narrow N; MXU has huge slack in this HBM-bound kernel).
    q = jnp.dot(hm, wq_ref[...], preferred_element_type=jnp.float32) + bq_ref[...]
    e = jnp.dot(hm, we_ref[...], preferred_element_type=jnp.float32) + be_ref[...]

    # torch F.normalize(dim=1, eps=1e-12):  e / max(||e||, 1e-12)
    sumsq = jnp.sum(e * e, axis=1, keepdims=True)      # XLU cross-lane reduce
    inv = lax.rsqrt(jnp.maximum(sumsq, 1e-24))         # EUP; == 1/max(||e||,1e-12)

    q_ref[...] = q.astype(q_ref.dtype)
    e_ref[...] = (e * inv).astype(e_ref.dtype)


def pack_params(params, matmul_dtype):
    """Pad the hidden dim to HIDDEN_PAD (exact zero padding) and cast matmul
    operands to matmul_dtype; biases stay f32."""
    w1, b1 = params["w1"], params["b1"]
    w2, b2 = params["w2"], params["b2"]
    wq, bq = params["wq"], params["bq"]
    we, be = params["we"], params["be"]
    D = w1.shape[0]
    A = wq.shape[1]
    E = we.shape[1]

    def pad2(a, shape):
        return jnp.zeros(shape, jnp.float32).at[:a.shape[0], :a.shape[1]].set(a)

    w1p = pad2(w1, (D, HIDDEN_PAD)).astype(matmul_dtype)
    b1p = pad2(b1, (1, HIDDEN_PAD))
    w2p = pad2(w2, (HIDDEN_PAD, HIDDEN_PAD)).astype(matmul_dtype)
    b2p = pad2(b2, (1, HIDDEN_PAD))
    wqp = pad2(wq, (HIDDEN_PAD, A)).astype(matmul_dtype)
    wep = pad2(we, (HIDDEN_PAD, E)).astype(matmul_dtype)
    return (w1p, b1p, w2p, b2p, wqp, bq, wep, be), A, E


@functools.partial(jax.jit, static_argnames=("tile_b", "matmul_dtype"))
def agent_network_forward(x, params, *, tile_b=None, matmul_dtype=jnp.bfloat16):
    """x: (B, input_dim) float32.  Returns (q_vals (B,A), embeddings (B,E))."""
    B, D = x.shape
    (w1p, b1p, w2p, b2p, wqp, bq, wep, be), A, E = pack_params(params, matmul_dtype)

    tb = tile_b if tile_b is not None else _choose_tile_b(B)
    grid = (pl.cdiv(B, tb),)

    def rep(shape):  # weights / biases replicated across the batch grid
        return pl.BlockSpec(shape, lambda i: (0, 0))

    msize = jnp.dtype(matmul_dtype).itemsize
    weight_bytes = ((D * HIDDEN_PAD + HIDDEN_PAD * HIDDEN_PAD
                     + HIDDEN_PAD * (A + E)) * msize
                    + (2 * HIDDEN_PAD + A + E) * 4)          # biases f32
    flops = 2 * B * (D * HIDDEN_PAD + HIDDEN_PAD * HIDDEN_PAD
                     + HIDDEN_PAD * (A + E))
    bytes_accessed = (B * D * x.dtype.itemsize                # x read (native dtype)
                      + weight_bytes
                      + B * (A + E) * 4)                      # narrow f32 outputs

    # Simple VMEM budget (double-buffered x tile + outputs + activations +
    # weights) with headroom; stays below every chip's scoped default.
    vmem_need = (2 * tb * D * 4 + 2 * tb * (A + E) * 4
                 + 3 * tb * HIDDEN_PAD * 4 + 2 * weight_bytes)
    vmem_limit = int(min(max(4 * vmem_need, 16 << 20), 32 << 20))

    kernel = functools.partial(_agent_kernel, matmul_dtype=matmul_dtype)

    q_vals, embeddings = pl.pallas_call(
        kernel,
        out_shape=(jax.ShapeDtypeStruct((B, A), jnp.float32),
                   jax.ShapeDtypeStruct((B, E), jnp.float32)),
        grid_spec=pltpu.PrefetchScalarGridSpec(
            num_scalar_prefetch=0,
            grid=grid,
            in_specs=[
                pl.BlockSpec((tb, D), lambda i: (i, 0)),             # x tile
                rep((D, HIDDEN_PAD)), rep((1, HIDDEN_PAD)),          # fc1
                rep((HIDDEN_PAD, HIDDEN_PAD)), rep((1, HIDDEN_PAD)),  # fc2
                rep((HIDDEN_PAD, A)), rep((1, A)),                   # q_head
                rep((HIDDEN_PAD, E)), rep((1, E)),                   # embed_head
            ],
            out_specs=(pl.BlockSpec((tb, A), lambda i: (i, 0)),
                       pl.BlockSpec((tb, E), lambda i: (i, 0))),
        ),
        compiler_params=pltpu.CompilerParams(
            dimension_semantics=("parallel",),
            vmem_limit_bytes=vmem_limit),
        cost_estimate=pl.CostEstimate(
            flops=flops, transcendentals=B, bytes_accessed=bytes_accessed),
    )(x, w1p, b1p, w2p, b2p, wqp, bq, wep, be)

    return q_vals, embeddings


def init_params(key, input_dim, num_actions, embed_dim, hidden=HIDDEN):
    """Deterministic init matching the PyTorch module's Linear shapes.
    Weights are stored already transposed as (in, out)."""
    ks = jax.random.split(key, 8)

    def lin(kw, kb, fan_in, fan_out):
        bound = 1.0 / jnp.sqrt(fan_in)
        w = jax.random.uniform(kw, (fan_in, fan_out), jnp.float32, -bound, bound)
        b = jax.random.uniform(kb, (1, fan_out), jnp.float32, -bound, bound)
        return w, b

    w1, b1 = lin(ks[0], ks[1], input_dim, hidden)
    w2, b2 = lin(ks[2], ks[3], hidden, hidden)
    wq, bq = lin(ks[4], ks[5], hidden, num_actions)
    we, be = lin(ks[6], ks[7], hidden, embed_dim)
    return dict(w1=w1, b1=b1, w2=w2, b2=b2, wq=wq, bq=bq, we=we, be=be)


def reference_forward(x, p):
    h = jnp.maximum(x @ p["w1"] + p["b1"], 0.0)
    h = jnp.maximum(h @ p["w2"] + p["b2"], 0.0)
    q = h @ p["wq"] + p["bq"]
    e = h @ p["we"] + p["be"]
    n = jnp.sqrt(jnp.sum(e * e, axis=1, keepdims=True))
    return q, e / jnp.maximum(n, 1e-12)


if __name__ == "__main__":
    key = jax.random.PRNGKey(0)
    input_dim, num_actions, embed_dim = 32, 4, 16
    kx, kx2, kp = jax.random.split(key, 3)
    params = init_params(kp, input_dim, num_actions, embed_dim)

    # 1) Tile-aligned batch, f32 matmul-operand path.
    B = 8
    x = jax.random.normal(kx, (B, input_dim), jnp.float32)
    q_ref, e_ref = reference_forward(x, params)
    q, e = agent_network_forward(x, params, matmul_dtype=jnp.float32)
    q = jax.block_until_ready(q)
    e = jax.block_until_ready(e)
    assert q.shape == (B, num_actions)
    assert e.shape == (B, embed_dim)
    assert jnp.allclose(q, q_ref, atol=2e-2, rtol=2e-2)
    assert jnp.allclose(e, e_ref, atol=2e-2, rtol=2e-2)

    # 2) Default bf16 matmul-operand path + ragged batch (B=12 -> tile 8,
    #    grid 2, partial trailing block; padded rows never written back).
    B2 = 12
    x2 = jax.random.normal(kx2, (B2, input_dim), jnp.float32)
    q2_ref, e2_ref = reference_forward(x2, params)
    q2, e2 = agent_network_forward(x2, params)          # bf16 default
    q2 = jax.block_until_ready(q2)
    e2 = jax.block_until_ready(e2)
    assert q2.shape == (B2, num_actions)
    assert e2.shape == (B2, embed_dim)
    assert jnp.allclose(q2, q2_ref, atol=1e-1, rtol=1e-1)
    assert jnp.allclose(e2, e2_ref, atol=1e-1, rtol=1e-1)

    print("KERNEL_OK")
</pallas_src>

<mosaic_0001>
module attributes {stable_mosaic.version = 11 : i64} {
  func.func @_agent_kernel(%arg0: i32, %arg1: memref<8x32xf32, #tpu.memory_space<vmem>>, %arg2: memref<32x128xf32, #tpu.memory_space<vmem>>, %arg3: memref<1x128xf32, #tpu.memory_space<vmem>>, %arg4: memref<128x128xf32, #tpu.memory_space<vmem>>, %arg5: memref<1x128xf32, #tpu.memory_space<vmem>>, %arg6: memref<128x4xf32, #tpu.memory_space<vmem>>, %arg7: memref<1x4xf32, #tpu.memory_space<vmem>>, %arg8: memref<128x16xf32, #tpu.memory_space<vmem>>, %arg9: memref<1x16xf32, #tpu.memory_space<vmem>>, %arg10: memref<8x4xf32, #tpu.memory_space<vmem>>, %arg11: memref<8x16xf32, #tpu.memory_space<vmem>>) attributes {dimension_semantics = [#tpu.dimension_semantics<parallel>], iteration_bounds = array<i64: 1>, scalar_prefetch = 0 : i64, scratch_operands = 0 : i64, tpu.core_type = #tpu.core_type<tc>, window_params = [{transform_indices = @transform_0, window_bounds = array<i64: 8, 32>}, {pipeline_mode = #tpu.pipeline_mode<synchronous>, transform_indices = @transform_1, window_bounds = array<i64: 32, 128>}, {pipeline_mode = #tpu.pipeline_mode<synchronous>, transform_indices = @transform_2, window_bounds = array<i64: 1, 128>}, {pipeline_mode = #tpu.pipeline_mode<synchronous>, transform_indices = @transform_3, window_bounds = array<i64: 128, 128>}, {pipeline_mode = #tpu.pipeline_mode<synchronous>, transform_indices = @transform_4, window_bounds = array<i64: 1, 128>}, {pipeline_mode = #tpu.pipeline_mode<synchronous>, transform_indices = @transform_5, window_bounds = array<i64: 128, 4>}, {pipeline_mode = #tpu.pipeline_mode<synchronous>, transform_indices = @transform_6, window_bounds = array<i64: 1, 4>}, {pipeline_mode = #tpu.pipeline_mode<synchronous>, transform_indices = @transform_7, window_bounds = array<i64: 128, 16>}, {pipeline_mode = #tpu.pipeline_mode<synchronous>, transform_indices = @transform_8, window_bounds = array<i64: 1, 16>}, {transform_indices = @transform_9, window_bounds = array<i64: 8, 4>}, {transform_indices = @transform_10, window_bounds = array<i64: 8, 16>}]} {
    %c0 = arith.constant 0 : index
    %c0_0 = arith.constant 0 : index
    %0 = vector.load %arg1[%c0, %c0_0] : memref<8x32xf32, #tpu.memory_space<vmem>>, vector<8x32xf32>
    %c0_1 = arith.constant 0 : index
    %c0_2 = arith.constant 0 : index
    %1 = vector.load %arg2[%c0_1, %c0_2] : memref<32x128xf32, #tpu.memory_space<vmem>>, vector<32x128xf32>
    %cst = arith.constant dense<0.000000e+00> : vector<8x128xf32>
    %2 = tpu.matmul %0, %1, %cst {dimension_numbers = #tpu.dot_dimension_numbers<[1], [0], [0], [1], [0, 0, 1, 1], [], []>} : vector<8x32xf32>, vector<32x128xf32>, vector<8x128xf32> -> vector<8x128xf32>
    %c0_3 = arith.constant 0 : index
    %c0_4 = arith.constant 0 : index
    %3 = vector.load %arg3[%c0_3, %c0_4] : memref<1x128xf32, #tpu.memory_space<vmem>>, vector<1x128xf32>
    %4 = vector.broadcast %3 : vector<1x128xf32> to vector<8x128xf32>
    %5 = arith.addf %2, %4 : vector<8x128xf32>
    %cst_5 = arith.constant 0.000000e+00 : f32
    %6 = vector.broadcast %cst_5 : f32 to vector<8x128xf32>
    %7 = arith.maximumf %5, %6 : vector<8x128xf32>
    %c0_6 = arith.constant 0 : index
    %c0_7 = arith.constant 0 : index
    %8 = vector.load %arg4[%c0_6, %c0_7] : memref<128x128xf32, #tpu.memory_space<vmem>>, vector<128x128xf32>
    %cst_8 = arith.constant dense<0.000000e+00> : vector<8x128xf32>
    %9 = tpu.matmul %7, %8, %cst_8 {dimension_numbers = #tpu.dot_dimension_numbers<[1], [0], [0], [1], [0, 0, 1, 1], [], []>} : vector<8x128xf32>, vector<128x128xf32>, vector<8x128xf32> -> vector<8x128xf32>
    %c0_9 = arith.constant 0 : index
    %c0_10 = arith.constant 0 : index
    %10 = vector.load %arg5[%c0_9, %c0_10] : memref<1x128xf32, #tpu.memory_space<vmem>>, vector<1x128xf32>
    %11 = vector.broadcast %10 : vector<1x128xf32> to vector<8x128xf32>
    %12 = arith.addf %9, %11 : vector<8x128xf32>
    %cst_11 = arith.constant 0.000000e+00 : f32
    %13 = vector.broadcast %cst_11 : f32 to vector<8x128xf32>
    %14 = arith.maximumf %12, %13 : vector<8x128xf32>
    %c0_12 = arith.constant 0 : index
    %c0_13 = arith.constant 0 : index
    %15 = vector.load %arg6[%c0_12, %c0_13] : memref<128x4xf32, #tpu.memory_space<vmem>>, vector<128x4xf32>
    %cst_14 = arith.constant dense<0.000000e+00> : vector<8x4xf32>
    %16 = tpu.matmul %14, %15, %cst_14 {dimension_numbers = #tpu.dot_dimension_numbers<[1], [0], [0], [1], [0, 0, 1, 1], [], []>} : vector<8x128xf32>, vector<128x4xf32>, vector<8x4xf32> -> vector<8x4xf32>
    %c0_15 = arith.constant 0 : index
    %c0_16 = arith.constant 0 : index
    %17 = vector.load %arg7[%c0_15, %c0_16] : memref<1x4xf32, #tpu.memory_space<vmem>>, vector<1x4xf32>
    %18 = vector.broadcast %17 : vector<1x4xf32> to vector<8x4xf32>
    %19 = arith.addf %16, %18 : vector<8x4xf32>
    %c0_17 = arith.constant 0 : index
    %c0_18 = arith.constant 0 : index
    %20 = vector.load %arg8[%c0_17, %c0_18] : memref<128x16xf32, #tpu.memory_space<vmem>>, vector<128x16xf32>
    %cst_19 = arith.constant dense<0.000000e+00> : vector<8x16xf32>
    %21 = tpu.matmul %14, %20, %cst_19 {dimension_numbers = #tpu.dot_dimension_numbers<[1], [0], [0], [1], [0, 0, 1, 1], [], []>} : vector<8x128xf32>, vector<128x16xf32>, vector<8x16xf32> -> vector<8x16xf32>
    %c0_20 = arith.constant 0 : index
    %c0_21 = arith.constant 0 : index
    %22 = vector.load %arg9[%c0_20, %c0_21] : memref<1x16xf32, #tpu.memory_space<vmem>>, vector<1x16xf32>
    %23 = vector.broadcast %22 : vector<1x16xf32> to vector<8x16xf32>
    %24 = arith.addf %21, %23 : vector<8x16xf32>
    %25 = arith.mulf %24, %24 : vector<8x16xf32>
    %cst_22 = arith.constant dense<0.000000e+00> : vector<8xf32>
    %26 = vector.multi_reduction <add>, %25, %cst_22 [1] : vector<8x16xf32> to vector<8xf32>
    %27 = vector.shape_cast %26 : vector<8xf32> to vector<8x1xf32>
    %cst_23 = arith.constant 1.000000e-24 : f32
    %28 = vector.broadcast %cst_23 : f32 to vector<8x1xf32>
    %29 = arith.maximumf %27, %28 : vector<8x1xf32>
    %30 = math.rsqrt %29 : vector<8x1xf32>
    %c0_24 = arith.constant 0 : index
    %c0_25 = arith.constant 0 : index
    %31 = vector.load %arg10[%c0_24, %c0_25] : memref<8x4xf32, #tpu.memory_space<vmem>>, vector<8x4xf32>
    tpu.vector_store %arg10[%c0_24, %c0_25], %19 {strides = array<i32>} : memref<8x4xf32, #tpu.memory_space<vmem>>, vector<8x4xf32>,
    %32 = vector.broadcast %30 : vector<8x1xf32> to vector<8x16xf32>
    %33 = arith.mulf %24, %32 : vector<8x16xf32>
    %c0_26 = arith.constant 0 : index
    %c0_27 = arith.constant 0 : index
    %34 = vector.load %arg11[%c0_26, %c0_27] : memref<8x16xf32, #tpu.memory_space<vmem>>, vector<8x16xf32>
    tpu.vector_store %arg11[%c0_26, %c0_27], %33 {strides = array<i32>} : memref<8x16xf32, #tpu.memory_space<vmem>>, vector<8x16xf32>,
    return
  }
  func.func @transform_0(%arg0: i32) -> (i32, i32) {
    %c0_i32 = arith.constant 0 : i32
    %c0_i32_0 = arith.constant 0 : i32
    return %arg0, %c0_i32 : i32, i32
  }
  func.func @transform_1(%arg0: i32) -> (i32, i32) {
    %c0_i32 = arith.constant 0 : i32
    %c0_i32_0 = arith.constant 0 : i32
    %c0_i32_1 = arith.constant 0 : i32
    return %c0_i32, %c0_i32_0 : i32, i32
  }
  func.func @transform_2(%arg0: i32) -> (i32, i32) {
    %c0_i32 = arith.constant 0 : i32
    %c0_i32_0 = arith.constant 0 : i32
    %c0_i32_1 = arith.constant 0 : i32
    return %c0_i32, %c0_i32_0 : i32, i32
  }
  func.func @transform_3(%arg0: i32) -> (i32, i32) {
    %c0_i32 = arith.constant 0 : i32
    %c0_i32_0 = arith.constant 0 : i32
    %c0_i32_1 = arith.constant 0 : i32
    return %c0_i32, %c0_i32_0 : i32, i32
  }
  func.func @transform_4(%arg0: i32) -> (i32, i32) {
    %c0_i32 = arith.constant 0 : i32
    %c0_i32_0 = arith.constant 0 : i32
    %c0_i32_1 = arith.constant 0 : i32
    return %c0_i32, %c0_i32_0 : i32, i32
  }
  func.func @transform_5(%arg0: i32) -> (i32, i32) {
    %c0_i32 = arith.constant 0 : i32
    %c0_i32_0 = arith.constant 0 : i32
    %c0_i32_1 = arith.constant 0 : i32
    return %c0_i32, %c0_i32_0 : i32, i32
  }
  func.func @transform_6(%arg0: i32) -> (i32, i32) {
    %c0_i32 = arith.constant 0 : i32
    %c0_i32_0 = arith.constant 0 : i32
    %c0_i32_1 = arith.constant 0 : i32
    return %c0_i32, %c0_i32_0 : i32, i32
  }
  func.func @transform_7(%arg0: i32) -> (i32, i32) {
    %c0_i32 = arith.constant 0 : i32
    %c0_i32_0 = arith.constant 0 : i32
    %c0_i32_1 = arith.constant 0 : i32
    return %c0_i32, %c0_i32_0 : i32, i32
  }
  func.func @transform_8(%arg0: i32) -> (i32, i32) {
    %c0_i32 = arith.constant 0 : i32
    %c0_i32_0 = arith.constant 0 : i32
    %c0_i32_1 = arith.constant 0 : i32
    return %c0_i32, %c0_i32_0 : i32, i32
  }
  func.func @transform_9(%arg0: i32) -> (i32, i32) {
    %c0_i32 = arith.constant 0 : i32
    %c0_i32_0 = arith.constant 0 : i32
    return %arg0, %c0_i32 : i32, i32
  }
  func.func @transform_10(%arg0: i32) -> (i32, i32) {
    %c0_i32 = arith.constant 0 : i32
    %c0_i32_0 = arith.constant 0 : i32
    return %arg0, %c0_i32 : i32, i32
  }
}

</mosaic_0001>

<bundles_post_ra>
// kernel: agent_network_forward.1
= control target key start
LH: loop header
LB: loop body
LE: loop exit
PB: predicated region body
PF: predicated region fallthrough
CT: control target
= control target key end

     0   :  { %v635_v1 = vmov 0.0   ;;  %vm636_vm0 = vmmov 0   ;;  %vm47_vm1 = vcmask 261120   ;;  %s930_s0 = inlined_call_operand.vmem [shape: f32[8,32], index: 0, kind: input, shape index: {}]   ;;  %s931_s1 = inlined_call_operand.vmem [shape: f32[32,128], index: 1, kind: input, shape index: {}]   ;;  %s932_s2 = inlined_call_operand.vmem [shape: f32[1,128], index: 2, kind: input, shape index: {}]   ;;  %s933_s3 = inlined_call_operand.vmem [shape: f32[128,128], index: 3, kind: input, shape index: {}]   ;;  %s934_s4 = inlined_call_operand.vmem [shape: f32[1,128], index: 4, kind: input, shape index: {}]   ;;  %s935_s5 = inlined_call_operand.vmem [shape: f32[128,4], index: 5, kind: input, shape index: {}]   ;;  %s936_s6 = inlined_call_operand.vmem [shape: f32[1,4], index: 6, kind: input, shape index: {}]   ;;  %s937_s7 = inlined_call_operand.vmem [shape: f32[128,16], index: 7, kind: input, shape index: {}]   ;;  %s938_s8 = inlined_call_operand.vmem [shape: f32[1,16], index: 8, kind: input, shape index: {}]   ;;  %s939_s9 = inlined_call_operand.vmem [shape: f32[8,4], index: 9, kind: output, shape index: {0}]   ;;  %s940_s10 = inlined_call_operand.hbm [shape: f32[8,16], index: 10, kind: output, shape index: {1}]  }
   0x1   :  { %v39_v0 = vld [vmem:[%s931_s1 + $0x18] sm:$0xff]  ;;  %492 = vmatprep.subr.mxu0 %v635_v1  ;;  %v38_v2 = vld [vmem:[%s931_s1 + $0x10] sm:$0xff]  ;;  %500 = vmatprep.mubr.msk.f32.mxu0 %vm636_vm0, %v635_v1  ;;  %v37_v5 = vld [vmem:[%s931_s1 + $0x8] sm:$0xff] }
   0x2   :  { %v137_v3 = vld [vmem:[%s933_s3 + $0x78] sm:$0xff]  ;;  %493 = vmatpush3.msra.mxu0 %v39_v0  ;;  %503 = vmatprep.subr.mxu1 %v635_v1  ;;  %v136_v4 = vld [vmem:[%s933_s3 + $0x70] sm:$0xff]  ;;  %v135_v6 = vld [vmem:[%s933_s3 + $0x68] sm:$0xff] }
   0x3   :  { %494 = vmatprep.subr.mxu0 %v635_v1  ;;  %504 = vmatpush3.msra.mxu1 %v137_v3  ;;  %v36_v7 = vld [vmem:[%s931_s1] sm:$0xff] }
   0x4   :  { %495 = vmatpush3.msra.mxu0 %v38_v2  ;;  %505 = vmatprep.subr.mxu1 %v635_v1  ;;  %v35_v8 = vld [vmem:[%s930_s0] sm:$0xff] }
   0x5   :  { %496 = vmatprep.subr.mxu0 %v635_v1  ;;  %506 = vmatpush3.msra.mxu1 %v136_v4  ;;  %v134_v9 = vld [vmem:[%s933_s3 + $0x60] sm:$0xff] }
   0x6   :  { %497 = vmatpush3.msra.mxu0 %v37_v5  ;;  %507 = vmatprep.subr.mxu1 %v635_v1 }
   0x7   :  { %16 = vsyncpa [#allocation3], 0  ;;  %498 = vmatprep.subr.mxu0 %v635_v1  ;;  %508 = vmatpush3.msra.mxu1 %v135_v6  ;;  %v133_v10 = vld [vmem:[%s933_s3 + $0x58] sm:$0xff]  ;;  %v132_v11 = vld [vmem:[%s933_s3 + $0x50] sm:$0xff]  ;;  %vm409_vm2 = vcmask 31744   ;;  %vm403_vm3 = vcmask 130048  }
   0x8   :  { %499 = vmatpush3.msra.mxu0 %v36_v7  ;;  %509 = vmatprep.subr.mxu1 %v635_v1  ;;  %v131_v12 = vld [vmem:[%s933_s3 + $0x48] sm:$0xff]  ;;  %v130_v13 = vld [vmem:[%s933_s3 + $0x40] sm:$0xff]  ;;  %v129_v14 = vld [vmem:[%s933_s3 + $0x38] sm:$0xff] }
   0x9   :  { %501 = vmatmul.mubr.msk.f32.vlgmr.msra.gmra.mxu0 %vm47_vm1, %v35_v8  ;;  %510 = vmatpush3.msra.mxu1 %v134_v9  ;;  %v128_v15 = vld [vmem:[%s933_s3 + $0x30] sm:$0xff]  ;;  %v127_v16 = vld [vmem:[%s933_s3 + $0x28] sm:$0xff]  ;;  %v126_v17 = vld [vmem:[%s933_s3 + $0x20] sm:$0xff] }
   0xa   :  { %511 = vmatprep.subr.mxu1 %v635_v1  ;;  %535 = vmatprep.mubr.msk.f32.mxu1 %vm636_vm0, %v635_v1  ;;  %v125_v18 = vld [vmem:[%s933_s3 + $0x18] sm:$0xff]  ;;  %v124_v19 = vld [vmem:[%s933_s3 + $0x10] sm:$0xff]  ;;  %v123_v20 = vld [vmem:[%s933_s3 + $0x8] sm:$0xff] }
   0xb   :  { %512 = vmatpush3.msra.mxu1 %v133_v10  ;;  %538 = vmatprep.subr.mxu0 %v635_v1  ;;  %v122_v21 = vld [vmem:[%s933_s3] sm:$0xff]  ;;  %v231_v22 = vld [vmem:[%s935_s5 + $0x78] sm:$0xff]  ;;  %v230_v23 = vld [vmem:[%s935_s5 + $0x70] sm:$0xff] }
   0xc   :  { %513 = vmatprep.subr.mxu1 %v635_v1  ;;  %570 = vmatprep.mubr.msk.f32.mxu0 %vm636_vm0, %v635_v1  ;;  %v229_v24 = vld [vmem:[%s935_s5 + $0x68] sm:$0xff]  ;;  %v228_v25 = vld [vmem:[%s935_s5 + $0x60] sm:$0xff]  ;;  %v227_v26 = vld [vmem:[%s935_s5 + $0x58] sm:$0xff] }
   0xd   :  { %514 = vmatpush3.msra.mxu1 %v132_v11  ;;  %539 = vmatpush3.msra.mxu0 %v231_v22  ;;  %v226_v27 = vld [vmem:[%s935_s5 + $0x50] sm:$0xff]  ;;  %v225_v28 = vld [vmem:[%s935_s5 + $0x48] sm:$0xff]  ;;  %v224_v29 = vld [vmem:[%s935_s5 + $0x40] sm:$0xff] }
   0xe   :  { %515 = vmatprep.subr.mxu1 %v635_v1  ;;  %540 = vmatprep.subr.mxu0 %v635_v1  ;;  %v223_v30 = vld [vmem:[%s935_s5 + $0x38] sm:$0xff]  ;;  %v222_v31 = vld [vmem:[%s935_s5 + $0x30] sm:$0xff]  ;;  %v221_v32 = vld [vmem:[%s935_s5 + $0x28] sm:$0xff] }
   0xf   :  { %516 = vmatpush3.msra.mxu1 %v131_v12  ;;  %541 = vmatpush3.msra.mxu0 %v230_v23  ;;  %v220_v33 = vld [vmem:[%s935_s5 + $0x20] sm:$0xff]  ;;  %v219_v34 = vld [vmem:[%s935_s5 + $0x18] sm:$0xff]  ;;  %v323_v41 = vld [vmem:[%s937_s7 + $0x70] sm:$0xff] }
  0x10   :  { %517 = vmatprep.subr.mxu1 %v635_v1  ;;  %542 = vmatprep.subr.mxu0 %v635_v1  ;;  %v431_v35 = vld [vmem:[%s932_s2] ss:$0 sm:$0xff]  ;;  %v324_v40 = vld [vmem:[%s937_s7 + $0x78] sm:$0xff]  ;;  %v322_v42 = vld [vmem:[%s937_s7 + $0x68] sm:$0xff] }
  0x11   :  { %518 = vmatpush3.msra.mxu1 %v130_v13  ;;  %543 = vmatpush3.msra.mxu0 %v229_v24  ;;  %v321_v43 = vld [vmem:[%s937_s7 + $0x60] sm:$0xff]  ;;  %v320_v44 = vld [vmem:[%s937_s7 + $0x58] sm:$0xff]  ;;  %v319_v45 = vld [vmem:[%s937_s7 + $0x50] sm:$0xff] }
  0x12   :  { %519 = vmatprep.subr.mxu1 %v635_v1  ;;  %544 = vmatprep.subr.mxu0 %v635_v1  ;;  %v318_v46 = vld [vmem:[%s937_s7 + $0x48] sm:$0xff]  ;;  %v317_v47 = vld [vmem:[%s937_s7 + $0x40] sm:$0xff]  ;;  %v316_v48 = vld [vmem:[%s937_s7 + $0x38] sm:$0xff] }
  0x13   :  { %520 = vmatpush3.msra.mxu1 %v129_v14  ;;  %545 = vmatpush3.msra.mxu0 %v228_v25  ;;  %v315_v49 = vld [vmem:[%s937_s7 + $0x30] sm:$0xff]  ;;  %v314_v50 = vld [vmem:[%s937_s7 + $0x28] sm:$0xff]  ;;  %v313_v51 = vld [vmem:[%s937_s7 + $0x20] sm:$0xff] }
  0x14   :  { %521 = vmatprep.subr.mxu1 %v635_v1  ;;  %546 = vmatprep.subr.mxu0 %v635_v1  ;;  %v312_v52 = vld [vmem:[%s937_s7 + $0x18] sm:$0xff]  ;;  %v218_v53 = vld [vmem:[%s935_s5 + $0x10] sm:$0xff]  ;;  %v217_v55 = vld [vmem:[%s935_s5 + $0x8] sm:$0xff] }
  0x15   :  { %522 = vmatpush3.msra.mxu1 %v128_v15  ;;  %547 = vmatpush3.msra.mxu0 %v227_v26  ;;  %v311_v54 = vld [vmem:[%s937_s7 + $0x10] sm:$0xff]  ;;  %v310_v56 = vld [vmem:[%s937_s7 + $0x8] sm:$0xff]  ;;  %v216_v57 = vld [vmem:[%s935_s5] sm:$0xff] }
  0x16   :  { %523 = vmatprep.subr.mxu1 %v635_v1  ;;  %548 = vmatprep.subr.mxu0 %v635_v1  ;;  %v309_v58 = vld [vmem:[%s937_s7] sm:$0xff] }
  0x17   :  { %524 = vmatpush3.msra.mxu1 %v127_v16  ;;  %549 = vmatpush3.msra.mxu0 %v226_v27  ;;  %v433_v59 = vld [vmem:[%s934_s4] ss:$0 sm:$0xff] }
  0x18   :  { %525 = vmatprep.subr.mxu1 %v635_v1  ;;  %550 = vmatprep.subr.mxu0 %v635_v1  ;;  %v434_v0 = vld [vmem:[%s936_s6] ss:$0 sm:$0xff]  ;;  %s637_s6 = smov [#allocation2]  }
  0x19   :  { %526 = vmatpush3.msra.mxu1 %v126_v17  ;;  %551 = vmatpush3.msra.mxu0 %v225_v28 }
  0x1a   :  { %527 = vmatprep.subr.mxu1 %v635_v1  ;;  %552 = vmatprep.subr.mxu0 %v635_v1 }
  0x1b   :  { %528 = vmatpush3.msra.mxu1 %v125_v18  ;;  %553 = vmatpush3.msra.mxu0 %v224_v29 }
  0x1c   :  { %529 = vmatprep.subr.mxu1 %v635_v1  ;;  %554 = vmatprep.subr.mxu0 %v635_v1 }
  0x1d   :  { %530 = vmatpush3.msra.mxu1 %v124_v19  ;;  %555 = vmatpush3.msra.mxu0 %v223_v30 }
  0x1e   :  { %531 = vmatprep.subr.mxu1 %v635_v1  ;;  %556 = vmatprep.subr.mxu0 %v635_v1 }
  0x1f   :  { %532 = vmatpush3.msra.mxu1 %v123_v20  ;;  %557 = vmatpush3.msra.mxu0 %v222_v31 }
  0x20   :  { %533 = vmatprep.subr.mxu1 %v635_v1  ;;  %558 = vmatprep.subr.mxu0 %v635_v1 }
  0x21   :  { %534 = vmatpush3.msra.mxu1 %v122_v21  ;;  %559 = vmatpush3.msra.mxu0 %v221_v32 }
  0x22   :  { %573 = vmatprep.subr.mxu1 %v635_v1  ;;  %560 = vmatprep.subr.mxu0 %v635_v1 }
  0x23   :  { %561 = vmatpush3.msra.mxu0 %v220_v33 }
  0x24   :  { %562 = vmatprep.subr.mxu0 %v635_v1 }
  0x25   :  { %563 = vmatpush3.msra.mxu0 %v219_v34 }
  0x26   :  { %564 = vmatprep.subr.mxu0 %v635_v1 }
  0x27   :  { %565 = vmatpush3.msra.mxu0 %v218_v53 }
  0x28   :  { %566 = vmatprep.subr.mxu0 %v635_v1 }
  0x29   :  { %567 = vmatpush3.msra.mxu0 %v217_v55 }
  0x2a   :  { %568 = vmatprep.subr.mxu0 %v635_v1 }
  0x2b   :  { %569 = vmatpush3.msra.mxu0 %v216_v57 }
  0xc9   :  { %v117_v36 = vpop.f32.mrf.mxu0 }
  0xca   :  { %v118_v37 = vadd.f32 %v431_v35, %v117_v36 }
  0xcb   :  { %v502_v38 = vpop.f32.mrf.mxu0 }
  0xcc   :  { %v121_v39 = vmax.f32 %v118_v37, 0.0 }
  0xce   :  { %536 = vmatmul.mubr.f32.vlgmr.msra.gmra.mxu1 %v121_v39 }
  0xcf   :  { %574 = vmatpush3.msra.mxu1 %v324_v40  ;;  %605 = vmatprep.mubr.msk.f32.mxu1 %vm636_vm0, %v635_v1 }
  0xd0   :  { %575 = vmatprep.subr.mxu1 %v635_v1 }
  0xd1   :  { %576 = vmatpush3.msra.mxu1 %v323_v41 }
  0xd2   :  { %577 = vmatprep.subr.mxu1 %v635_v1 }
  0xd3   :  { %578 = vmatpush3.msra.mxu1 %v322_v42 }
  0xd4   :  { %579 = vmatprep.subr.mxu1 %v635_v1 }
  0xd5   :  { %580 = vmatpush3.msra.mxu1 %v321_v43 }
  0xd6   :  { %581 = vmatprep.subr.mxu1 %v635_v1 }
  0xd7   :  { %582 = vmatpush3.msra.mxu1 %v320_v44 }
  0xd8   :  { %583 = vmatprep.subr.mxu1 %v635_v1 }
  0xd9   :  { %584 = vmatpush3.msra.mxu1 %v319_v45 }
  0xda   :  { %585 = vmatprep.subr.mxu1 %v635_v1 }
  0xdb   :  { %586 = vmatpush3.msra.mxu1 %v318_v46 }
  0xdc   :  { %587 = vmatprep.subr.mxu1 %v635_v1 }
  0xdd   :  { %588 = vmatpush3.msra.mxu1 %v317_v47 }
  0xde   :  { %589 = vmatprep.subr.mxu1 %v635_v1 }
  0xdf   :  { %590 = vmatpush3.msra.mxu1 %v316_v48 }
  0xe0   :  { %591 = vmatprep.subr.mxu1 %v635_v1 }
  0xe1   :  { %592 = vmatpush3.msra.mxu1 %v315_v49 }
  0xe2   :  { %593 = vmatprep.subr.mxu1 %v635_v1 }
  0xe3   :  { %594 = vmatpush3.msra.mxu1 %v314_v50 }
  0xe4   :  { %595 = vmatprep.subr.mxu1 %v635_v1 }
  0xe5   :  { %596 = vmatpush3.msra.mxu1 %v313_v51 }
  0xe6   :  { %597 = vmatprep.subr.mxu1 %v635_v1 }
  0xe7   :  { %598 = vmatpush3.msra.mxu1 %v312_v52 }
  0xe8   :  { %599 = vmatprep.subr.mxu1 %v635_v1 }
  0xe9   :  { %600 = vmatpush3.msra.mxu1 %v311_v54 }
  0xea   :  { %601 = vmatprep.subr.mxu1 %v635_v1 }
  0xeb   :  { %602 = vmatpush3.msra.mxu1 %v310_v56 }
  0xec   :  { %603 = vmatprep.subr.mxu1 %v635_v1  ;;  %v435_v1 = vld [vmem:[%s938_s8] ss:$0 sm:$0xff]  ;;  %s421_s8 = sshll.u32 %s637_s6, 4  ;;  %s422_s8 = int_to_ptr.vmem [resolvable:$true] %s421_s8 }
  0xed   :  { %604 = vmatpush3.msra.mxu1 %v309_v58  ;;  %s613_s0 = scalar_lea.vmem %s422_s8, 128  ;;  %p618_p1 = scmp.lt.s32.totalorder %s422_s8, %s422_s8 }
  0xee   :  { %p614_p0 = scmp.ne.s32.totalorder %s422_s8, %s613_s0  ;;  %p619_p2 = scmp.lt.s32.totalorder %s613_s0, %s613_s0 }
  0xf0   :  { %p620_p3 = por %p619_p2, %p618_p1 }
  0xf2   :  { %p621_p4 = pnand %p620_p3, %p614_p0 }
 0x18e   :  { %v211_v60 = vpop.f32.mrf.mxu1 }
 0x18f   :  { %v212_v61 = vadd.f32 %v433_v59, %v211_v60 }
 0x190   :  { %v537_v62 = vpop.f32.mrf.mxu1 }
 0x191   :  { %v215_v63 = vmax.f32 %v212_v61, 0.0 }
 0x193   :  { %571 = vmatmul.mubr.f32.vlgmr.msra.gmra.mxu0 %v215_v63  ;;  %606 = vmatmul.mubr.f32.vlgmr.msra.gmra.mxu1 %v215_v63 }
 0x253   :  { %v305_v2 = vpop.f32.mrf.mxu0  ;;  %v398_v3 = vpop.f32.mrf.mxu1 }
 0x254   :  { %v306_v4 = vadd.f32 %v434_v0, %v305_v2  ;;  %v399_v5 = vadd.f32 %v435_v1, %v398_v3 }
 0x255   :  { %v572_v6 = vpop.f32.mrf.mxu0  ;;  %v607_v7 = vpop.f32.mrf.mxu1 }
 0x256   :  { %410 = vst.msk [vmem:[%s939_s9] sm:$0xff] %vm409_vm2, %v306_v4  ;;  %v402_v8 = vmul.f32 %v399_v5, %v399_v5 }
 0x258   :  { %v404_v9 = vsel %vm403_vm3, %v402_v8, 0.0 }
 0x259   :  { %405 = vadd.xlane.f32.xlu0 %v404_v9 }
 0x2e2   :  { %v406_v10 = vpop.xlane.xlu0 %405 }
 0x2e3   :  { %v407_v11 = vmax.f32 %v406_v10, 1e-24 }
 0x2e5   :  { %611 = vrsqrt.f32 %v407_v11 }
 0x2f2   :  { %v612_v12 = vpop.eup %611 }
 0x2f3   :  { %v411_v13 = vmul.f32 %v612_v12, %v399_v5 }
 0x2f5   :  { %412 = vst.msk [vmem:[#allocation2] sm:$0xff] %vm403_vm3, %v411_v13 }
 0x2f6   :  { %624 = shalt.err (!%p621_p4)
}
 0x2f7   :  { %424 = dma.vmem_to_hbm [thread:$0]  %s422_s8, 128, %s940_s10, [#allocation3]  }
 0x2f8   :  { %633 = dma.done.wait [#allocation3], 128  }
 0x2f9   :  { %634 = vsyncadd [#allocation3], 4294967168 }
 0x2fa   :  { %430 = vsyncpa [#allocation3], 1 }

</bundles_post_ra>
